<compile_context>
chip_gen: v7x
topology: tpu7x:2x2x1
jax: 0.10.0
libtpu: 0.0.40
codegen_flags: <defaults>
</compile_context>

<pallas_src>
import jax
import jax.numpy as jnp
import numpy as np
from jax.experimental import pallas as pl
from jax.experimental.pallas import tpu as pltpu


def detect_head_kernel(x_ref, w_ref, b_ref, o_ref):
    # x_ref: (C, TN)   pixel tile of the input (batch dim squeezed away)
    # w_ref: (Co, C)   fused cls+reg weights (Co = 8 * anchor_number)
    # b_ref: (Co, 1)   fused bias (f32)
    # o_ref: (Co, TN)  fused output tile (psm rows first, then rm rows)
    acc = jnp.dot(w_ref[...], x_ref[...], preferred_element_type=jnp.float32)
    o_ref[...] = (acc + b_ref[...]).astype(o_ref.dtype)


def _cdiv(a, b):
    return -(-a // b)


def _round_up(x, m):
    return _cdiv(x, m) * m


def detect_head_forward(x_nchw, params, *, tile_n=4096):
    """x_nchw: (B, C, H, W). params: (w_cls, b_cls, w_reg, b_reg) in PyTorch
    conventions (OIHW conv weights with 1x1 kernels)."""
    w_cls, b_cls, w_reg, b_reg = params
    B, C, H, W = x_nchw.shape
    A = w_cls.shape[0]
    Co = 8 * A                                  # A (cls) rows + 7A (reg) rows
    HW = H * W
    dtype = x_nchw.dtype

    # ---- wrapper-side repack: free reshapes only (no transpose / pad) ------
    x3 = x_nchw.reshape(B, C, HW)

    # fuse both 1x1-conv heads into one (Co, C) weight + (Co, 1) f32 bias
    w = jnp.concatenate(
        [w_cls.reshape(A, C), w_reg.reshape(7 * A, C)], axis=0
    ).astype(dtype)
    b = jnp.concatenate([b_cls, b_reg], axis=0).reshape(Co, 1).astype(jnp.float32)

    # ---- pixel-tile selection ----------------------------------------------
    LANE = 128
    # conservative double-buffered (input + output) budget: fits v5e's 16 MiB
    # scoped-VMEM default and v7x's 32 MiB scoped / 64 MiB physical VMEM even
    # with both TensorCores holding their own buffers.
    VMEM_BUDGET = 12 * 1024 * 1024
    tn_cap = max(LANE, VMEM_BUDGET // (2 * (C + Co) * 4))
    tn = min(int(tile_n), int(tn_cap))
    if tn >= HW:
        tn = HW                                 # full-extent block, no padding
    else:
        tn = max(LANE, (tn // LANE) * LANE)     # lane-aligned; last block masked
    n_tiles = _cdiv(HW, tn)

    # guarantee >= 2 parallel grid steps so v7x's 2nd TensorCore isn't idle
    if B * n_tiles < 2 and HW >= 2 * LANE:
        tn = _round_up(_cdiv(HW, 2), LANE)
        n_tiles = _cdiv(HW, tn)

    out = pl.pallas_call(
        detect_head_kernel,
        out_shape=jax.ShapeDtypeStruct((B, Co, HW), dtype),
        grid_spec=pltpu.PrefetchScalarGridSpec(
            num_scalar_prefetch=0,
            grid=(B, n_tiles),
            in_specs=[
                # streamed pixel tile (batch dim squeezed out of the kernel)
                pl.BlockSpec((None, C, tn), lambda bi, ti: (bi, 0, ti)),
                # resident fused weights / bias (DMA'd once, constant index)
                pl.BlockSpec((Co, C), lambda bi, ti: (0, 0)),
                pl.BlockSpec((Co, 1), lambda bi, ti: (0, 0)),
            ],
            out_specs=pl.BlockSpec((None, Co, tn), lambda bi, ti: (bi, 0, ti)),
        ),
        compiler_params=pltpu.CompilerParams(
            dimension_semantics=("parallel", "parallel"),   # megacore on v7x
        ),
    )(x3, w, b)

    # free reshape back to NCHW; split fused channels into the two heads
    y = out.reshape(B, Co, H, W)
    return {"psm": y[:, :A], "rm": y[:, A:]}


def init_params(key, in_channel, anchor_number):
    """Deterministic synthetic parameters (shapes match the nn.Module)."""
    ks = jax.random.split(key, 4)
    w_cls = jax.random.normal(ks[0], (anchor_number, in_channel, 1, 1),
                              jnp.float32) * 0.10
    b_cls = jax.random.normal(ks[1], (anchor_number,), jnp.float32) * 0.10
    w_reg = jax.random.normal(ks[2], (7 * anchor_number, in_channel, 1, 1),
                              jnp.float32) * 0.10
    b_reg = jax.random.normal(ks[3], (7 * anchor_number,), jnp.float32) * 0.10
    return (w_cls, b_cls, w_reg, b_reg)


def ref_forward(x, w_cls, b_cls, w_reg, b_reg):
    """Plain-JAX reference mirroring the PyTorch forward (NCHW / OIHW)."""
    dn = ("NCHW", "OIHW", "NCHW")
    psm = jax.lax.conv_general_dilated(x, w_cls, (1, 1), "VALID",
                                       dimension_numbers=dn)
    psm = psm + b_cls[None, :, None, None]
    rm = jax.lax.conv_general_dilated(x, w_reg, (1, 1), "VALID",
                                      dimension_numbers=dn)
    rm = rm + b_reg[None, :, None, None]
    return {"psm": psm, "rm": rm}


if __name__ == "__main__":
    key = jax.random.PRNGKey(0)
    batch, in_channel, spatial, anchor_number = 2, 64, 16, 2

    k_x, k_p = jax.random.split(key)
    x = jax.random.normal(k_x, (batch, in_channel, spatial, spatial),
                          jnp.float32)
    params = init_params(k_p, in_channel, anchor_number)

    out = detect_head_forward(x, params)
    out = jax.tree_util.tree_map(jax.block_until_ready, out)

    ref = ref_forward(x, *params)
    assert out["psm"].shape == (batch, anchor_number, spatial, spatial)
    assert out["rm"].shape == (batch, 7 * anchor_number, spatial, spatial)
    np.testing.assert_allclose(np.asarray(out["psm"]), np.asarray(ref["psm"]),
                               rtol=1e-4, atol=1e-4)
    np.testing.assert_allclose(np.asarray(out["rm"]), np.asarray(ref["rm"]),
                               rtol=1e-4, atol=1e-4)
    print("KERNEL_OK")
</pallas_src>

<mosaic_0001>
module attributes {stable_mosaic.version = 11 : i64} {
  func.func @detect_head_kernel(%arg0: i32, %arg1: i32, %arg2: memref<1x64x256xf32, #tpu.memory_space<vmem>>, %arg3: memref<16x64xf32, #tpu.memory_space<vmem>>, %arg4: memref<16x1xf32, #tpu.memory_space<vmem>>, %arg5: memref<1x16x256xf32, #tpu.memory_space<vmem>>) attributes {dimension_semantics = [#tpu.dimension_semantics<parallel>, #tpu.dimension_semantics<parallel>], iteration_bounds = array<i64: 2, 1>, scalar_prefetch = 0 : i64, scratch_operands = 0 : i64, tpu.core_type = #tpu.core_type<tc>, window_params = [{transform_indices = @transform_0, window_bounds = array<i64: 1, 64, 256>}, {pipeline_mode = #tpu.pipeline_mode<synchronous>, transform_indices = @transform_1, window_bounds = array<i64: 16, 64>}, {pipeline_mode = #tpu.pipeline_mode<synchronous>, transform_indices = @transform_2, window_bounds = array<i64: 16, 1>}, {transform_indices = @transform_3, window_bounds = array<i64: 1, 16, 256>}]} {
    %c0 = arith.constant 0 : index
    %c0_0 = arith.constant 0 : index
    %0 = vector.load %arg3[%c0, %c0_0] : memref<16x64xf32, #tpu.memory_space<vmem>>, vector<16x64xf32>
    %c0_1 = arith.constant 0 : index
    %c0_2 = arith.constant 0 : index
    %c0_3 = arith.constant 0 : index
    %1 = vector.load %arg2[%c0_1, %c0_2, %c0_3] : memref<1x64x256xf32, #tpu.memory_space<vmem>>, vector<1x64x256xf32>
    %2 = vector.shape_cast %1 : vector<1x64x256xf32> to vector<64x256xf32>
    %cst = arith.constant dense<0.000000e+00> : vector<16x256xf32>
    %3 = tpu.matmul %0, %2, %cst {dimension_numbers = #tpu.dot_dimension_numbers<[1], [0], [0], [1], [0, 0, 1, 1], [], []>} : vector<16x64xf32>, vector<64x256xf32>, vector<16x256xf32> -> vector<16x256xf32>
    %c0_4 = arith.constant 0 : index
    %c0_5 = arith.constant 0 : index
    %4 = vector.load %arg4[%c0_4, %c0_5] : memref<16x1xf32, #tpu.memory_space<vmem>>, vector<16x1xf32>
    %5 = vector.broadcast %4 : vector<16x1xf32> to vector<16x256xf32>
    %6 = arith.addf %3, %5 : vector<16x256xf32>
    %c0_6 = arith.constant 0 : index
    %c0_7 = arith.constant 0 : index
    %c0_8 = arith.constant 0 : index
    %7 = vector.load %arg5[%c0_6, %c0_7, %c0_8] : memref<1x16x256xf32, #tpu.memory_space<vmem>>, vector<1x16x256xf32>
    %8 = vector.shape_cast %7 : vector<1x16x256xf32> to vector<16x256xf32>
    %9 = vector.shape_cast %6 : vector<16x256xf32> to vector<1x16x256xf32>
    tpu.vector_store %arg5[%c0_6, %c0_7, %c0_8], %9 {strides = array<i32>} : memref<1x16x256xf32, #tpu.memory_space<vmem>>, vector<1x16x256xf32>,
    return
  }
  func.func @transform_0(%arg0: i32, %arg1: i32) -> (i32, i32, i32) {
    %c0_i32 = arith.constant 0 : i32
    %c0_i32_0 = arith.constant 0 : i32
    return %arg0, %c0_i32, %arg1 : i32, i32, i32
  }
  func.func @transform_1(%arg0: i32, %arg1: i32) -> (i32, i32) {
    %c0_i32 = arith.constant 0 : i32
    %c0_i32_0 = arith.constant 0 : i32
    %c0_i32_1 = arith.constant 0 : i32
    return %c0_i32, %c0_i32_0 : i32, i32
  }
  func.func @transform_2(%arg0: i32, %arg1: i32) -> (i32, i32) {
    %c0_i32 = arith.constant 0 : i32
    %c0_i32_0 = arith.constant 0 : i32
    %c0_i32_1 = arith.constant 0 : i32
    return %c0_i32, %c0_i32_0 : i32, i32
  }
  func.func @transform_3(%arg0: i32, %arg1: i32) -> (i32, i32, i32) {
    %c0_i32 = arith.constant 0 : i32
    %c0_i32_0 = arith.constant 0 : i32
    return %arg0, %c0_i32, %arg1 : i32, i32, i32
  }
}

</mosaic_0001>

<bundles_post_ra>
// kernel: tpu_custom_call.1
= control target key start
LH: loop header
LB: loop body
LE: loop exit
PB: predicated region body
PF: predicated region fallthrough
CT: control target
= control target key end

     0   :  { %8 = vsyncpa [#allocation3], 0  ;;  %s890_s0 = inlined_call_operand.hbm [shape: f32[2,64,256], index: 0, kind: input, shape index: {}]   ;;  %s891_s1 = inlined_call_operand.vmem [shape: f32[16,64], index: 1, kind: input, shape index: {}]   ;;  %s892_s2 = inlined_call_operand.vmem [shape: f32[16,1], index: 2, kind: input, shape index: {}]   ;;  %s893_s3 = inlined_call_operand.hbm [shape: f32[2,16,256], index: 3, kind: output, shape index: {}]  }
   0x1   :  { %10 = vsyncpa [#allocation3 + $0x1], 0 }
   0x2   :  { %11 = vsyncpa [#allocation4], 0 }
   0x3   :  { %13 = vsyncpa [#allocation4 + $0x1], 0  ;;  %s684_s12 = smov 0   ;;  %s686_s13 = smov 0  }
   0x4   :  { %s688_s14 = smov 0   ;;  %s690_s15 = smov 0  }
   0x5   :  { %s692_s16 = smov 0   ;;  %s694_s17 = smov 0  }
   0x6 LB: > { %s430_s18 = sadd.s32 4294967295, %s654_s17   ;;  %s431_s19 = sadd.s32 4294967294, %s654_s17   ;;  %s654_s17 = sphi %s694_s17, %s19_s17   ;;  %s650_s16 = sphi %s692_s16, %s908_s16   ;;  %s646_s15 = sphi %s690_s15, %s907_s15   ;;  %s642_s14 = sphi %s688_s14, %s906_s14   ;;  %s638_s13 = sphi %s686_s13, %s905_s13   ;;  %s634_s12 = sphi %s684_s12, %s904_s12  }
   0x7   : > { %s31_s20 = sadd.s32 1, %s650_s16  ;;  %s40_s21 = sadd.s32 1, %s642_s14 }
   0x8   : > { %p33_p0 = scmp.ge.s32.totalorder %s31_s20, 2  ;;  %p47_p1 = scmp.ne.s32.totalorder %s642_s14, %s638_s13 }
   0x9   : > { %p48_p2 = scmp.eq.s32.totalorder %s654_s17, 0  ;;  %p53_p3 = scmp.ne.s32.totalorder %s638_s13, %s634_s12 }
   0xa   : > { %s910_s20 = smov (%p33_p0, %s31_s20), 0  ;;  %p54_p5 = scmp.eq.s32.totalorder %s430_s18, 0 }
   0xb   : > { %p725_p4 = por %p48_p2, %p47_p1  ;;  %s35_s23 = ssub.s32 %s650_s16, %s910_s20 }
   0xc   : > { %p121_p6 = scmp.eq.s32.totalorder %s430_s18, 1  ;;  %p38_p7 = scmp.eq.s32.totalorder %s35_s23, 0 }
   0xd   : > { %p731_p8 = por %p54_p5, %p53_p3  ;;  %p127_p10 = scmp.eq.s32.totalorder %s431_s19, 1 }
   0xe   : > { %p735_p9 = por %p121_p6, %p47_p1  ;;  %p485_p13 = scmp.lt.s32.totalorder %s654_s17, 2 }
   0xf   : > { %s740_s26 = scalar_select %p38_p7, %s642_s14, %s40_s21  }
  0x10   : > { %s897_s25 = scalar_select %p735_p9, 1, 0 }
  0x11   : > { %p742_p11 = por %p127_p10, %p53_p3  ;;  %s153_s28 = sand.u32 1, %s642_s14  }
  0x12   : > { %s434_s29 = sshll.u32 %s153_s28, 7  ;;  %s447_s30 = sshll.u32 %s650_s16, 11 }
  0x13   : > { %s898_s27 = scalar_select %p742_p11, 1, 0 }
  0x14   : > { %s753_s6 = scalar_lea.hbm %s890_s0, %s447_s30  ;;  %s157_s7 = scalar_lea.vmem [#allocation2], %s434_s29 }
  0x15   : > { %s166_s8 = sshll.u32 %s157_s7, 4  ;;  %p759_p0 = pnand %p485_p13, %p725_p4  ;;  %s755_s8 = int_to_ptr.vmem [resolvable:$true] %s166_s8 }
  0x16   : > { %s764_s10 = scalar_lea.sflag [#allocation3], %s153_s28  ;;  %s542_s11 = scalar_lea.hbm %s753_s6, 2048 }
  0x17   : > { %p543_p2 = scmp.ne.s32.totalorder %s753_s6, %s542_s11  ;;  %p544_p3 = pneg %p759_p0 }
  0x18   : > { %s547_s21 = scalar_lea.hbm %s890_s0, 4096  ;;  %p548_p4 = scmp.lt.u32.totalorder %s753_s6, %s890_s0 }
  0x19   : > { %p545_p5 = pnand %p544_p3, %p543_p2  ;;  %p549_p7 = scmp.lt.u32.totalorder %s547_s21, %s542_s11 }
  0x1a   : > { %p551_p13 = scmp.lt.u32.totalorder %s542_s11, %s753_s6 }
  0x1b   : > { %p546_p6 = pneg %p545_p5  ;;  %p550_p10 = por %p549_p7, %p548_p4 }
  0x1d   : > { %p552_p12 = por %p551_p13, %p550_p10 }
  0x1f   : > { %p553_p1 = pnand %p552_p12, %p546_p6 }
  0x21   : > { %556 = shalt.err (!%p553_p1)
}
  0x22   : > { %s557_s28 = scalar_lea.vmem %s755_s8, 2048  ;;  %s656_s29 = smov [#allocation2]  }
  0x23   : > { %p558_p2 = scmp.ne.s32.totalorder %s755_s8, %s557_s28  ;;  %s562_s30 = sshll.u32 %s656_s29, 4  ;;  %s563_s30 = int_to_ptr.vmem [resolvable:$false] %s562_s30 }
  0x24   : > { %s564_s4 = scalar_lea.vmem %s563_s30, 4096  ;;  %p565_p9 = scmp.lt.s32.totalorder %s755_s8, %s563_s30 }
  0x25   : > { %p560_p5 = pnand %p558_p2, %p544_p3  ;;  %p566_p4 = scmp.lt.s32.totalorder %s564_s4, %s557_s28 }
  0x27   : > { %p561_p11 = pneg %p560_p5  ;;  %p567_p7 = por %p566_p4, %p565_p9 }
  0x29   : > { %p568_p10 = pnand %p567_p7, %p561_p11 }
  0x2b   : > { %571 = shalt.err (!%p568_p10)
}
  0x2c   : > { %s657_s5 = smov 256   ;;  %s658_s7 = smov 16  }
  0x2d   : > { %480 = dma.hbm_to_vmem [thread:$0]  (!%p759_p0), %s753_s6, 2048, %s755_s8, %s764_s10, %s657_s5, %s657_s5, %s658_s7  }
  0x2e   : > { %p174_p12 = scmp.lt.s32.totalorder %s654_s17, 3  ;;  %p900_p1 = scmp.ge.s32.totalorder %s654_s17, 1 }
  0x30   : > { %p175_p3 = pnand %p900_p1, %p174_p12 }
  0x31   : > { %s796_s11 = sand.u32 (!%p175_p3), 1, %s638_s13  }
  0x32   : > { %178 = sbr.rel (%p175_p3) target bundleno = 307 (0x133), region = 32  ;;  %s438_s18 = sshll.u32 (!%p175_p3), %s796_s11, 7 }
  0x33   : > { %s181_s19 = scalar_lea.sflag (!%p175_p3), [#allocation3], %s796_s11  ;;  %s800_s21 = scalar_lea.vmem (!%p175_p3), [#allocation2], %s438_s18 }
  0x39   : > { %625 = dma.done.wait (%p731_p8), %s181_s19, 2048  }
  0x3a   : > { %627 = vsyncadd (%p731_p8), %s181_s19, 4294965248  ;;  %v659_v0 = vmov 0.0   ;;  %v660_v1 = vmov 0   ;;  %v212_v2 = vld [vmem:[%s800_s21 + $0x8] sm:$0xff]  ;;  %v214_v3 = vld [vmem:[%s800_s21 + $0x18] sm:$0xff]  ;;  %vm239_vm0 = vcmask 523264  }
  0x3b   : > { %310 = vmatprep.mubr.f32.mxu0 %v659_v0  ;;  %316 = vmatprep.mubr.f32.mxu1 %v659_v0  ;;  %v211_v4 = vld [vmem:[%s800_s21] sm:$0xff]  ;;  %v449_v5 = vpack.c.bf16 %v214_v3, %v212_v2  ;;  %v213_v6 = vld [vmem:[%s800_s21 + $0x10] sm:$0xff]  ;;  %v216_v7 = vld [vmem:[%s800_s21 + $0x28] sm:$0xff]  ;;  %s439_s29 = sshll.u32 %s796_s11, 5  ;;  %s448_s5 = sshll.u32 %s646_s15, 9 }
  0x3c   : > { %541 = vset.pattern.permute.xlu0 %v660_v1  ;;  %v218_v8 = vld [vmem:[%s800_s21 + $0x38] sm:$0xff]  ;;  %v451_v9 = vpack.c.bf16 %v213_v6, %v211_v4  ;;  %v215_v11 = vld [vmem:[%s800_s21 + $0x20] sm:$0xff]  ;;  %v217_v12 = vld [vmem:[%s800_s21 + $0x30] sm:$0xff]  ;;  %s206_s30 = scalar_lea.vmem [#allocation5], %s439_s29  ;;  %s841_s19 = scalar_lea.hbm %s893_s3, %s448_s5 }
  0x3d   : > { %v453_v10 = vpack.c.bf16 %v218_v8, %v216_v7  ;;  %v220_v13 = vld [vmem:[%s800_s21 + $0x48] sm:$0xff]  ;;  %450 = vmatprep.subr.bf16.mxu0 %v449_v5  ;;  %465 = vmatprep.subr.bf16.mxu1 %v449_v5  ;;  %v222_v14 = vld [vmem:[%s800_s21 + $0x58] sm:$0xff]  ;;  %v455_v15 = vpack.c.bf16 %v217_v12, %v215_v11  ;;  %v219_v17 = vld [vmem:[%s800_s21 + $0x40] sm:$0xff]  ;;  %s343_s4 = sshll.u32 %s206_s30, 4  ;;  %s328_s15 = scalar_lea.sflag [#allocation4], %s796_s11  ;;  %s836_s4 = int_to_ptr.vmem [resolvable:$true] %s343_s4 }
  0x3e   : > { %452 = vmatpush1.bf16.msra.mxu0 %v451_v9  ;;  %469 = vmatpush1.bf16.msra.mxu1 %v451_v9  ;;  %v457_v16 = vpack.c.bf16 %v222_v14, %v220_v13  ;;  %v221_v18 = vld [vmem:[%s800_s21 + $0x50] sm:$0xff]  ;;  %v224_v19 = vld [vmem:[%s800_s21 + $0x68] sm:$0xff]  ;;  %v226_v20 = vld [vmem:[%s800_s21 + $0x78] sm:$0xff]  ;;  %p901_p9 = scmp.ne.s32.totalorder %s897_s25, 0  ;;  %s661_s24 = smov [#allocation5]  }
  0x3f   : > { %454 = vmatprep.subr.bf16.mxu0 %v453_v10  ;;  %466 = vmatprep.subr.bf16.mxu1 %v453_v10  ;;  %v227_v21 = vld [vmem:[%s892_s2] sm:$0xff]  ;;  %v459_v22 = vpack.c.bf16 %v221_v18, %v219_v17  ;;  %v228_v23 = vld [vmem:[%s892_s2 + $0x8] sm:$0xff]  ;;  %v461_v24 = vpack.c.bf16 %v226_v20, %v224_v19  ;;  %v225_v26 = vld [vmem:[%s800_s21 + $0x70] sm:$0xff]  ;;  %s576_s6 = sshll.u32 %s661_s24, 4  ;;  %s577_s6 = int_to_ptr.vmem [resolvable:$false] %s576_s6 }
  0x40   : > { %231 = vperm.xlu0 %541, %v227_v21   ;;  %v223_v25 = vld [vmem:[%s800_s21 + $0x60] sm:$0xff]  ;;  %v210_v29 = vld [vmem:[%s891_s1 + $0x8] sm:$0xff]  ;;  %s572_s21 = scalar_lea.vmem %s836_s4, 512  ;;  %s578_s8 = scalar_lea.vmem %s577_s6, 1024 }
  0x41   : > { %v463_v27 = vpack.c.bf16 %v225_v26, %v223_v25  ;;  %v209_v28 = vld [vmem:[%s891_s1] sm:$0xff]  ;;  %p573_p8 = scmp.ne.s32.totalorder %s836_s4, %s572_s21  ;;  %p579_p6 = scmp.lt.s32.totalorder %s836_s4, %s577_s6 }
  0x42   : > { %456 = vmatpush1.bf16.msra.mxu0 %v455_v15  ;;  %470 = vmatpush1.bf16.msra.mxu1 %v455_v15  ;;  %p580_p13 = scmp.lt.s32.totalorder %s578_s8, %s572_s21 }
  0x43   : > { %458 = vmatprep.subr.bf16.mxu0 %v457_v16  ;;  %467 = vmatprep.subr.bf16.mxu1 %v457_v16  ;;  %p574_p11 = pnand %p573_p8, %p901_p9 }
  0x44   : > { %236 = vperm.xlu0 %541, %v228_v23   ;;  %p581_p2 = por %p580_p13, %p579_p6 }
  0x45   : > { %p575_p0 = pneg %p574_p11 }
  0x46   : > { %460 = vmatpush1.bf16.msra.mxu0 %v459_v22  ;;  %471 = vmatpush1.bf16.msra.mxu1 %v459_v22 }
  0x47   : > { %462 = vmatprep.subr.bf16.mxu0 %v461_v24  ;;  %468 = vmatprep.subr.bf16.mxu1 %v461_v24  ;;  %p582_p5 = pnand %p581_p2, %p575_p0 }
  0x4a   : > { %464 = vmatpush1.bf16.msra.mxu0 %v463_v27  ;;  %472 = vmatpush1.bf16.msra.mxu1 %v463_v27 }
  0x4d   : > { %440 = vmatmul.mubr.msk.f32.vlgmr.msra.gmra.mrb[0].mxu0 %vm239_vm0, %v209_v28  ;;  %441 = vmatmul.mubr.msk.f32.vlgmr.msra.gmra.mrb[0].mxu1 %vm239_vm0, %v210_v29 }
  0xbf   : > { %v232_v30 = vpop.permute.xlu0 %231 }
  0xc3   : > { %v237_v31 = vpop.permute.xlu0 %236 }
 0x120   : > { %v312_v32 = vpop.f32.mrb[0].mxu0  ;;  %v318_v33 = vpop.f32.mrb[0].mxu1 }
 0x121   : > { %v313_v34 = vadd.f32 %v312_v32, %v232_v30  ;;  %v319_v35 = vadd.f32 %v318_v33, %v237_v31  ;;  %v314_v36 = vpop.f32.mrb[1].mxu0  ;;  %v320_v37 = vpop.f32.mrb[1].mxu1 }
 0x122   : > { %v315_v38 = vadd.f32 %v314_v36, %v232_v30  ;;  %v321_v39 = vadd.f32 %v320_v37, %v237_v31 }
 0x123   : > { %323 = vst [vmem:[%s206_s30] sm:$0xff] %v313_v34  ;;  %325 = vst [vmem:[%s206_s30 + $0x10] sm:$0xff] %v319_v35 }
 0x124   : > { %324 = vst [vmem:[%s206_s30 + $0x8] sm:$0xff] %v315_v38  ;;  %326 = vst [vmem:[%s206_s30 + $0x18] sm:$0xff] %v321_v39 }
 0x125   : > { %585 = shalt.err (!%p582_p5)
}
 0x126   : > { %s586_s9 = scalar_lea.hbm %s841_s19, 512  ;;  %s590_s23 = scalar_lea.hbm %s893_s3, 1024 }
 0x127   : > { %p587_p4 = scmp.ne.s32.totalorder %s841_s19, %s586_s9  ;;  %p591_p12 = scmp.lt.u32.totalorder %s841_s19, %s893_s3 }
 0x128   : > { %p592_p1 = scmp.lt.u32.totalorder %s590_s23, %s586_s9  ;;  %p594_p8 = scmp.lt.u32.totalorder %s586_s9, %s841_s19 }
 0x129   : > { %p588_p7 = pnand %p587_p4, %p901_p9 }
 0x12a   : > { %p593_p3 = por %p592_p1, %p591_p12 }
 0x12b   : > { %p589_p10 = pneg %p588_p7 }
 0x12c   : > { %p595_p11 = por %p594_p8, %p593_p3 }
 0x12e   : > { %p596_p0 = pnand %p595_p11, %p589_p10 }
 0x130   : > { %599 = shalt.err (!%p596_p0)
}
 0x131   : > { %s662_s30 = smov 256   ;;  %s663_s5 = smov 16  }
 0x132   : > { %475 = dma.vmem_to_hbm [thread:$0]  (%p901_p9), %s836_s4, 512, %s841_s19, %s328_s15, %s662_s30, %s662_s30, %s663_s5  }
 0x133 PF: > { %s358_s7 = sand.u32 1, %s634_s12   ;;  %p902_p6 = scmp.ne.s32.totalorder %s898_s27, 0 }
 0x134   : > { %p903_p13 = scmp.ge.s32.totalorder %s654_s17, 2  ;;  %s359_s18 = scalar_lea.sflag [#allocation4], %s358_s7 }
 0x136   : > { %p482_p2 = pnand %p903_p13, %p902_p6 }
 0x138   : > { %629 = dma.done.wait (!%p482_p2), %s359_s18, 512  }
 0x139   : > { %631 = vsyncadd (!%p482_p2), %s359_s18, 4294966784  ;;  %s19_s17 = sadd.s32 1, %s654_s17   ;;  %s904_s12 = smov %s638_s13 }
 0x13a   : > { %p16_p5 = scmp.ge.s32.totalorder %s19_s17, 4   ;;  %s905_s13 = smov %s642_s14 }
 0x13b   : > { %s906_s14 = smov %s740_s26  ;;  %s907_s15 = smov %s650_s16 }
 0x13c   : > { %s908_s16 = smov %s910_s20  ;;  %18 = sbr.rel (!%p16_p5) target bundleno = 6 (0x6), region = 77 }
 0x143   :  { %364 = vsyncpa [#allocation3], 1 }
 0x144   :  { %366 = vsyncpa [#allocation3 + $0x1], 1 }
 0x145   :  { %367 = vsyncpa [#allocation4], 1 }
 0x146   :  { %369 = vsyncpa [#allocation4 + $0x1], 1 }

</bundles_post_ra>
